<compile_context>
chip_gen: v6e
topology: v6e:2x2x1
jax: 0.10.0
libtpu: 0.0.40
codegen_flags: <defaults>
</compile_context>

<pallas_src>
import functools

import jax
import jax.numpy as jnp
from jax.experimental import pallas as pl
from jax.experimental.pallas import tpu as pltpu


# ------------------------- generation-aware budgets -------------------------

@functools.lru_cache(maxsize=None)
def _vmem_budget():
    """Returns (tile_budget_bytes, vmem_limit_bytes) for this chip generation."""
    try:
        phys = int(pltpu.get_tpu_info().vmem_capacity_bytes)
    except Exception:
        phys = 64 * 1024 * 1024               # conservative default (v7x-sized VMEM)
    if phys <= 96 * 1024 * 1024:              # v7x-class: 64 MiB physical VMEM
        tile_budget = 24 * 1024 * 1024
    else:                                     # v5e / v6e: 128 MiB physical VMEM
        tile_budget = 48 * 1024 * 1024
    vmem_limit = min(tile_budget + 16 * 1024 * 1024, phys * 7 // 8)
    return tile_budget, vmem_limit


def _round_up(x, m):
    return (x + m - 1) // m * m


def _m_tiling(M):
    """(Mp, TM): Mp % TM == 0, TM <= 512, 16-aligned for bf16 sublane packing."""
    if M <= 512:
        mp = max(_round_up(M, 16), 16)
        return mp, mp
    mp = _round_up(M, 512)
    return mp, 512


# ----------------------------- Pallas kernels ------------------------------

def _mm_kernel(x_ref, w_ref, b_ref, o_ref, *, relu):
    """Single-K-step: out = maybe_relu(x @ w + bias)."""
    out = jnp.dot(x_ref[...], w_ref[...],
                  preferred_element_type=jnp.float32) + b_ref[...]
    if relu:
        out = jnp.maximum(out, 0.0)
    o_ref[...] = out.astype(o_ref.dtype)


def _mm_res_kernel(x_ref, w_ref, b_ref, r_ref, o_ref, *, relu):
    """Single-K-step with fused residual add."""
    out = (jnp.dot(x_ref[...], w_ref[...], preferred_element_type=jnp.float32)
           + b_ref[...] + r_ref[...].astype(jnp.float32))
    if relu:
        out = jnp.maximum(out, 0.0)
    o_ref[...] = out.astype(o_ref.dtype)


def _mm_acc_kernel(x_ref, w_ref, b_ref, o_ref, acc_ref, *, relu):
    """Multi-K-step accumulation; grid = (M, N, K), K innermost."""
    k = pl.program_id(2)

    @pl.when(k == 0)
    def _():
        acc_ref[...] = jnp.zeros_like(acc_ref)

    acc_ref[...] += jnp.dot(x_ref[...], w_ref[...],
                            preferred_element_type=jnp.float32)

    @pl.when(k == pl.num_programs(2) - 1)
    def _():
        out = acc_ref[...] + b_ref[...]
        if relu:
            out = jnp.maximum(out, 0.0)
        o_ref[...] = out.astype(o_ref.dtype)


def _mm_res_acc_kernel(x_ref, w_ref, b_ref, r_ref, o_ref, acc_ref, *, relu):
    """Multi-K-step accumulation with fused residual add."""
    k = pl.program_id(2)

    @pl.when(k == 0)
    def _():
        acc_ref[...] = jnp.zeros_like(acc_ref)

    acc_ref[...] += jnp.dot(x_ref[...], w_ref[...],
                            preferred_element_type=jnp.float32)

    @pl.when(k == pl.num_programs(2) - 1)
    def _():
        out = acc_ref[...] + b_ref[...] + r_ref[...].astype(jnp.float32)
        if relu:
            out = jnp.maximum(out, 0.0)
        o_ref[...] = out.astype(o_ref.dtype)


def _maxpool4_kernel(a_ref, b_ref, c_ref, d_ref, o_ref):
    o_ref[...] = jnp.maximum(jnp.maximum(a_ref[...], b_ref[...]),
                             jnp.maximum(c_ref[...], d_ref[...]))


def _avgpool_kernel(x_ref, o_ref):
    # x_ref: (1, H*W, C) -> o_ref: (1, 1, C)
    o_ref[...] = jnp.mean(x_ref[...].astype(jnp.float32), axis=1,
                          keepdims=True).astype(o_ref.dtype)


# --------------------- fused matmul wrapper (hot path) ---------------------

_MATMUL_CACHE = {}


def _build_matmul_fn(M, K, Kp, Np, relu, has_res, out_dtype):
    tile_budget, vmem_limit = _vmem_budget()
    Mp, tm = _m_tiling(M)
    tn = min(Np, 512)

    # v7x has 2 TensorCores: guarantee >= 2 "parallel" grid tiles so the grid
    # shards across both cores (near-free on v5e/v6e at these sizes).
    if (Mp // tm) * (Np // tn) < 2:
        if tm >= 32 and (tm // 2) % 16 == 0 and Mp % (tm // 2) == 0:
            tm //= 2
        elif tn > 128:
            tn //= 2

    out_b = jnp.dtype(out_dtype).itemsize
    # Double-buffered per-step tile footprint, split into K-independent terms and
    # bytes-per-unit-K, used to derive the largest safe K tile.
    fixed = (2 * tm * tn * out_b            # out tile (x2 buffers)
             + tm * tn * 4                  # f32 accumulator scratch
             + 2 * tn * 4                   # bias tile (x2)
             + (2 * tm * tn * 2 if has_res else 0))
    per_k = 2 * tm * 2 + 2 * tn * 2         # x + w bytes per unit K (x2 buffers)
    cap_k = max((tile_budget - fixed) // per_k, 128)

    if Kp <= cap_k or Kp % 128:
        tk = Kp                             # single K step (covers stem + FC too)
    else:
        tk = (min(cap_k, Kp) // 128) * 128
        while Kp % tk:
            tk -= 128
    nk = Kp // tk

    bytes_accessed = (Mp * Kp * 2 + Kp * Np * 2 + Np * 4 + Mp * Np * out_b
                      + (Mp * Np * 2 if has_res else 0))
    cost = pl.CostEstimate(flops=2 * Mp * Kp * Np, transcendentals=0,
                           bytes_accessed=bytes_accessed)

    if nk == 1:
        grid = (Mp // tm, Np // tn)
        in_specs = [pl.BlockSpec((tm, Kp), lambda i, j: (i, 0)),   # patches (bf16)
                    pl.BlockSpec((Kp, tn), lambda i, j: (0, j)),   # folded weight
                    pl.BlockSpec((1, tn), lambda i, j: (0, j))]    # bias (f32)
        out_specs = pl.BlockSpec((tm, tn), lambda i, j: (i, j))
        if has_res:
            in_specs.append(pl.BlockSpec((tm, tn), lambda i, j: (i, j)))
            kern = functools.partial(_mm_res_kernel, relu=relu)
        else:
            kern = functools.partial(_mm_kernel, relu=relu)
        scratch = []
        sem = ("parallel", "parallel")
    else:
        grid = (Mp // tm, Np // tn, nk)
        in_specs = [pl.BlockSpec((tm, tk), lambda i, j, k: (i, k)),
                    pl.BlockSpec((tk, tn), lambda i, j, k: (k, j)),
                    pl.BlockSpec((1, tn), lambda i, j, k: (0, j))]
        out_specs = pl.BlockSpec((tm, tn), lambda i, j, k: (i, j))
        if has_res:
            in_specs.append(pl.BlockSpec((tm, tn), lambda i, j, k: (i, j)))
            kern = functools.partial(_mm_res_acc_kernel, relu=relu)
        else:
            kern = functools.partial(_mm_acc_kernel, relu=relu)
        scratch = [pltpu.VMEM((tm, tn), jnp.float32)]
        sem = ("parallel", "parallel", "arbitrary")

    call = pl.pallas_call(
        kern,
        out_shape=jax.ShapeDtypeStruct((Mp, Np), out_dtype),
        grid_spec=pltpu.PrefetchScalarGridSpec(
            num_scalar_prefetch=0,
            grid=grid,
            in_specs=in_specs,
            out_specs=out_specs,
            scratch_shapes=scratch),
        compiler_params=pltpu.CompilerParams(
            dimension_semantics=sem,
            vmem_limit_bytes=vmem_limit),
        cost_estimate=cost,
    )

    pad_m = Mp - M
    pad_k = Kp - K     # only the 7x7 stem (K=392) actually pads K

    if has_res:
        def fn(x, w, b, r):
            if pad_m or pad_k:
                x = jnp.pad(x, ((0, pad_m), (0, pad_k)))
            if pad_m:
                r = jnp.pad(r, ((0, pad_m), (0, 0)))
            out = call(x, w, b, r)
            return out[:M] if pad_m else out
    else:
        def fn(x, w, b):
            if pad_m or pad_k:
                x = jnp.pad(x, ((0, pad_m), (0, pad_k)))
            out = call(x, w, b)
            return out[:M] if pad_m else out

    return jax.jit(fn)


def fused_matmul(x, w_pad, b_pad, res=None, relu=False, out_dtype=jnp.bfloat16):
    """x: (M, K) bf16; w_pad: (Kp, Np) bf16 pre-padded; b_pad: (1, Np) f32."""
    M, K = x.shape
    Kp, Np = w_pad.shape
    key = (M, K, Kp, Np, bool(relu), res is not None, jnp.dtype(out_dtype).name)
    if key not in _MATMUL_CACHE:
        _MATMUL_CACHE[key] = _build_matmul_fn(
            M, K, Kp, Np, bool(relu), res is not None, out_dtype)
    if res is None:
        return _MATMUL_CACHE[key](x, w_pad, b_pad)
    return _MATMUL_CACHE[key](x, w_pad, b_pad, res)


# ----------------------------- conv / pool glue ----------------------------

def _im2col(x, kh, kw, stride, pad):
    """x: NHWC bf16 -> (N*Ho*Wo, kh*kw*C) patches (plain-JAX glue).

    TODO(synk): fuse this gather into the matmul kernel (per-tap accumulation)
    to remove the kh*kw HBM blow-up at large spatial sizes.
    """
    n, h, w, c = x.shape
    xp = jnp.pad(x, ((0, 0), (pad, pad), (pad, pad), (0, 0))) if pad else x
    ho = (h + 2 * pad - kh) // stride + 1
    wo = (w + 2 * pad - kw) // stride + 1
    cols = []
    for i in range(kh):
        for j in range(kw):
            cols.append(xp[:, i:i + stride * ho:stride,
                           j:j + stride * wo:stride, :])
    patches = jnp.concatenate(cols, axis=-1) if len(cols) > 1 else cols[0]
    return patches.reshape(n * ho * wo, kh * kw * c), ho, wo


def conv_apply(x, conv, stride, relu, residual=None):
    n = x.shape[0]
    patches, ho, wo = _im2col(x, conv['kh'], conv['kw'], stride, conv['pad'])
    res2d = (None if residual is None
             else residual.reshape(n * ho * wo, conv['Np']))
    out = fused_matmul(patches, conv['w'], conv['b'], res2d, relu)
    return out.reshape(n, ho, wo, conv['Np'])


def maxpool2x2(x):
    # nn.MaxPool2d(2) semantics: odd H/W are floored (last row/col dropped).
    # Channels are already padded to a 128 multiple -> lane-dense, unmasked stores.
    n, h, w, c = x.shape
    ho, wo = h // 2, w // 2
    M = n * ho * wo
    a = x[:, 0:2 * ho:2, 0:2 * wo:2, :].reshape(M, c)
    b = x[:, 0:2 * ho:2, 1:2 * wo:2, :].reshape(M, c)
    cc = x[:, 1:2 * ho:2, 0:2 * wo:2, :].reshape(M, c)
    d = x[:, 1:2 * ho:2, 1:2 * wo:2, :].reshape(M, c)
    Mp, tm = _m_tiling(M)                      # 16-aligned rows (bf16 sublanes)
    pad_m = Mp - M
    if pad_m:
        a, b, cc, d = [jnp.pad(t, ((0, pad_m), (0, 0))) for t in (a, b, cc, d)]
    out = pl.pallas_call(
        _maxpool4_kernel,
        out_shape=jax.ShapeDtypeStruct((Mp, c), x.dtype),
        grid=(Mp // tm,),
        in_specs=[pl.BlockSpec((tm, c), lambda i: (i, 0))] * 4,
        out_specs=pl.BlockSpec((tm, c), lambda i: (i, 0)),
        compiler_params=pltpu.CompilerParams(
            dimension_semantics=("parallel",)),
    )(a, b, cc, d)
    if pad_m:
        out = out[:M]
    return out.reshape(n, ho, wo, c)


def global_avgpool(x):
    # TODO(synk): add a reduction grid axis over H*W chunks for robustness at
    # large spatial sizes; at the ResNet tail (1x1x2048 here) one block fits VMEM.
    n, h, w, c = x.shape
    hw = h * w
    out = pl.pallas_call(
        _avgpool_kernel,
        out_shape=jax.ShapeDtypeStruct((n, 1, c), x.dtype),
        grid=(n,),
        in_specs=[pl.BlockSpec((1, hw, c), lambda i: (i, 0, 0))],
        out_specs=pl.BlockSpec((1, 1, c), lambda i: (i, 0, 0)),
        compiler_params=pltpu.CompilerParams(
            dimension_semantics=("parallel",)),
    )(x.reshape(n, hw, c))
    return out.reshape(n, c)


# ------------------------------ parameters ---------------------------------

def _bn_init(key, c, eps=1e-5):
    k1, k2 = jax.random.split(key)
    gamma = 1.0 + 0.1 * jax.random.normal(k1, (c,), jnp.float32)
    beta = 0.1 * jax.random.normal(k2, (c,), jnp.float32)
    running_mean = jnp.zeros((c,), jnp.float32)
    running_var = jnp.ones((c,), jnp.float32)
    scale = gamma / jnp.sqrt(running_var + eps)
    bias = beta - running_mean * scale
    return scale, bias


def _make_conv(key, kh, kw, cin, cin_store, cout, pad, conv_bias=False):
    """Conv(+bias)+BN with BN folded into a bf16 weight laid out for im2col over
    `cin_store` (padded) input channels; output channels padded to a 128 multiple
    (activations are kept in this padded layout between layers)."""
    k1, k2, k3 = jax.random.split(key, 3)
    cout_store = max(_round_up(cout, 128), 128)
    fan_in = kh * kw * cin
    w = jax.random.normal(k1, (kh * kw, cin, cout), jnp.float32) * (2.0 / fan_in) ** 0.5
    scale, bias = _bn_init(k2, cout)
    if conv_bias:
        b_conv = 0.01 * jax.random.normal(k3, (cout,), jnp.float32)
        bias = bias + b_conv * scale          # fold conv bias through BN
    w = w * scale[None, None, :]              # fold BN scale into the weight
    w_full = jnp.zeros((kh * kw, cin_store, cout_store), jnp.float32)
    w_full = w_full.at[:, :cin, :cout].set(w)
    K = kh * kw * cin_store
    Kp = _round_up(K, 128)                    # only the 7x7 stem actually pads
    w_pad = jnp.zeros((Kp, cout_store), jnp.bfloat16).at[:K, :].set(
        w_full.reshape(K, cout_store).astype(jnp.bfloat16))
    b_pad = jnp.zeros((1, cout_store), jnp.float32).at[:, :cout].set(bias)
    return {'w': w_pad, 'b': b_pad, 'kh': kh, 'kw': kw, 'pad': pad,
            'Np': cout_store}


def _init_block(key, cin, cin_store, cout, stride, with_shortcut):
    ks = jax.random.split(key, 3)
    blk = {
        'stride': stride,
        'conv1': _make_conv(ks[0], 3, 3, cin, cin_store, cout, pad=1),
        'conv2': _make_conv(ks[1], 3, 3, cout, cout, cout, pad=1),
        'shortcut': None,
    }
    if with_shortcut:
        blk['shortcut'] = _make_conv(ks[2], 1, 1, cin, cin_store, cout, pad=0,
                                     conv_bias=True)
    return blk


def _init_layer(key, cin, cin_store, cout, block_num, stride):
    keys = jax.random.split(key, block_num)
    blocks = [_init_block(keys[0], cin, cin_store, cout, stride, True)]
    for i in range(1, block_num):
        blocks.append(_init_block(keys[i], cout, cout, cout, 1, False))
    return blocks


def init_resnet101(key, input_channels=8, num_classes=2):
    ks = jax.random.split(key, 8)
    fc_w = (jax.random.normal(ks[6], (2048, num_classes), jnp.float32)
            * (1.0 / 2048 ** 0.5))
    Np = max(_round_up(num_classes, 128), 128)
    fc = {
        'w': jnp.zeros((2048, Np), jnp.bfloat16).at[:, :num_classes].set(
            fc_w.astype(jnp.bfloat16)),
        'b': jnp.zeros((1, Np), jnp.float32),
        'N': num_classes,
    }
    return {
        # stem: 64 logical output channels stored as 128 (padded lanes stay zero)
        'pre': _make_conv(ks[0], 7, 7, input_channels, input_channels, 64, pad=3),
        'layer1': _init_layer(ks[2], 64, 128, 256, 3, 2),
        'layer2': _init_layer(ks[3], 256, 256, 512, 4, 2),
        'layer3': _init_layer(ks[4], 512, 512, 1024, 23, 2),
        'layer4': _init_layer(ks[5], 1024, 1024, 2048, 3, 1),
        'fc': fc,
    }


# ------------------------------- forward -----------------------------------

def _res_block_forward(x, blk):
    if blk['shortcut'] is not None:
        residual = conv_apply(x, blk['shortcut'], blk['stride'], relu=False)
    else:
        residual = x
    h = conv_apply(x, blk['conv1'], blk['stride'], relu=True)
    # residual add + final ReLU are fused into the second conv's matmul epilogue
    return conv_apply(h, blk['conv2'], 1, relu=True, residual=residual)


def resnet101_forward(params, x_nchw):
    # input NCHW (PyTorch); activations NHWC bf16, channel-padded, internally.
    x = jnp.transpose(x_nchw, (0, 2, 3, 1)).astype(jnp.bfloat16)
    x = conv_apply(x, params['pre'], 1, relu=True)
    x = maxpool2x2(x)
    for name in ('layer1', 'layer2', 'layer3', 'layer4'):
        for blk in params[name]:
            x = _res_block_forward(x, blk)
    pooled = global_avgpool(x)                                   # (N, 2048) bf16
    logits = fused_matmul(pooled, params['fc']['w'], params['fc']['b'],
                          None, relu=False, out_dtype=jnp.float32)
    return logits[:, :params['fc']['N']]


# --------------------------------- main -------------------------------------

if __name__ == "__main__":
    key = jax.random.PRNGKey(0)
    pkey, xkey = jax.random.split(key)
    params = init_resnet101(pkey, input_channels=8, num_classes=2)
    x = jax.random.normal(xkey, (2, 8, 16, 16), jnp.float32)     # NCHW
    logits = resnet101_forward(params, x)
    logits = jax.block_until_ready(logits)
    assert logits.shape == (2, 2), logits.shape
    assert bool(jnp.all(jnp.isfinite(logits)))
    print("KERNEL_OK")
</pallas_src>

<mosaic_0001>
module attributes {stable_mosaic.version = 11 : i64} {
  func.func @_mm_kernel(%arg0: i32, %arg1: i32, %arg2: memref<256x512xbf16, #tpu.memory_space<vmem>>, %arg3: memref<512x128xbf16, #tpu.memory_space<vmem>>, %arg4: memref<1x128xf32, #tpu.memory_space<vmem>>, %arg5: memref<256x128xbf16, #tpu.memory_space<vmem>>) attributes {dimension_semantics = [#tpu.dimension_semantics<parallel>, #tpu.dimension_semantics<parallel>], iteration_bounds = array<i64: 2, 1>, scalar_prefetch = 0 : i64, scratch_operands = 0 : i64, tpu.core_type = #tpu.core_type<tc>, window_params = [{transform_indices = @transform_0, window_bounds = array<i64: 256, 512>}, {transform_indices = @transform_1, window_bounds = array<i64: 512, 128>}, {transform_indices = @transform_2, window_bounds = array<i64: 1, 128>}, {transform_indices = @transform_3, window_bounds = array<i64: 256, 128>}]} {
    %c0 = arith.constant 0 : index
    %c0_0 = arith.constant 0 : index
    %0 = vector.load %arg2[%c0, %c0_0] : memref<256x512xbf16, #tpu.memory_space<vmem>>, vector<256x512xbf16>
    %c0_1 = arith.constant 0 : index
    %c0_2 = arith.constant 0 : index
    %1 = vector.load %arg3[%c0_1, %c0_2] : memref<512x128xbf16, #tpu.memory_space<vmem>>, vector<512x128xbf16>
    %cst = arith.constant dense<0.000000e+00> : vector<256x128xf32>
    %2 = tpu.matmul %0, %1, %cst {dimension_numbers = #tpu.dot_dimension_numbers<[1], [0], [0], [1], [0, 0, 1, 1], [], []>} : vector<256x512xbf16>, vector<512x128xbf16>, vector<256x128xf32> -> vector<256x128xf32>
    %c0_3 = arith.constant 0 : index
    %c0_4 = arith.constant 0 : index
    %3 = vector.load %arg4[%c0_3, %c0_4] : memref<1x128xf32, #tpu.memory_space<vmem>>, vector<1x128xf32>
    %4 = vector.broadcast %3 : vector<1x128xf32> to vector<256x128xf32>
    %5 = arith.addf %2, %4 : vector<256x128xf32>
    %cst_5 = arith.constant 0.000000e+00 : f32
    %6 = vector.broadcast %cst_5 : f32 to vector<256x128xf32>
    %7 = arith.maximumf %5, %6 : vector<256x128xf32>
    %8 = arith.truncf %7 : vector<256x128xf32> to vector<256x128xbf16>
    %c0_6 = arith.constant 0 : index
    %c0_7 = arith.constant 0 : index
    %9 = vector.load %arg5[%c0_6, %c0_7] : memref<256x128xbf16, #tpu.memory_space<vmem>>, vector<256x128xbf16>
    tpu.vector_store %arg5[%c0_6, %c0_7], %8 {strides = array<i32>} : memref<256x128xbf16, #tpu.memory_space<vmem>>, vector<256x128xbf16>,
    return
  }
  func.func @transform_0(%arg0: i32, %arg1: i32) -> (i32, i32) {
    %c0_i32 = arith.constant 0 : i32
    %c0_i32_0 = arith.constant 0 : i32
    return %arg0, %c0_i32 : i32, i32
  }
  func.func @transform_1(%arg0: i32, %arg1: i32) -> (i32, i32) {
    %c0_i32 = arith.constant 0 : i32
    %c0_i32_0 = arith.constant 0 : i32
    return %c0_i32, %arg1 : i32, i32
  }
  func.func @transform_2(%arg0: i32, %arg1: i32) -> (i32, i32) {
    %c0_i32 = arith.constant 0 : i32
    %c0_i32_0 = arith.constant 0 : i32
    return %c0_i32, %arg1 : i32, i32
  }
  func.func @transform_3(%arg0: i32, %arg1: i32) -> (i32, i32) {
    %c0_i32 = arith.constant 0 : i32
    return %arg0, %arg1 : i32, i32
  }
}

</mosaic_0001>

<bundles_post_ra>
// kernel: fn.1
= control target key start
LH: loop header
LB: loop body
LE: loop exit
PB: predicated region body
PF: predicated region fallthrough
CT: control target
= control target key end

     0   :  { %8 = vsyncpa [#allocation3], 0  ;;  %s2615_s0 = inlined_call_operand.vmem [shape: bf16[512,512], index: 0, kind: input, shape index: {}]   ;;  %s2616_s1 = inlined_call_operand.vmem [shape: bf16[512,128], index: 1, kind: input, shape index: {}]   ;;  %s2617_s2 = inlined_call_operand.vmem [shape: f32[1,128], index: 2, kind: input, shape index: {}]   ;;  %s2618_s3 = inlined_call_operand.hbm [shape: bf16[512,128], index: 3, kind: output, shape index: {}]  }
   0x1   :  { %10 = vsyncpa [#allocation3 + $0x1], 0  ;;  %s2280_s12 = smov 0   ;;  %s2282_s13 = smov 0  }
   0x2   :  { %s2284_s14 = smov 0   ;;  %s2286_s15 = smov 0  }
   0x3   :  { %s2288_s16 = smov 0   ;;  %s2290_s17 = smov 0  }
   0x4 LB: > { %s1496_s18 = sadd.s32 4294967295, %s2255_s17   ;;  %s1497_s19 = sadd.s32 4294967294, %s2255_s17   ;;  %s2255_s17 = sphi %s2290_s17, %s16_s17   ;;  %s2251_s16 = sphi %s2288_s16, %s2625_s16   ;;  %s2247_s15 = sphi %s2286_s15, %s2624_s15   ;;  %s2243_s14 = sphi %s2284_s14, %s2623_s14   ;;  %s2239_s13 = sphi %s2282_s13, %s2622_s13   ;;  %s2235_s12 = sphi %s2280_s12, %s2621_s12  }
   0x5   : > { %s28_s20 = sadd.s32 1, %s2251_s16  ;;  %s115_s21 = sadd.s32 1, %s2243_s14 }
   0x6   : > { %p30_p0 = scmp.ge.s32.totalorder %s28_s20, 2  ;;  %p125_p1 = scmp.ne.s32.totalorder %s2243_s14, %s2239_s13 }
   0x7   : > { %p126_p2 = scmp.eq.s32.totalorder %s1496_s18, 1  ;;  %p131_p3 = scmp.ne.s32.totalorder %s2239_s13, %s2235_s12 }
   0x8   : > { %s2627_s20 = smov (%p30_p0, %s28_s20), 0  ;;  %p132_p5 = scmp.eq.s32.totalorder %s1497_s19, 1 }
   0x9   : > { %p2320_p4 = por %p126_p2, %p125_p1  ;;  %s110_s23 = ssub.s32 %s2251_s16, %s2627_s20 }
   0xa   : > { %p1502_p6 = scmp.ge.s32.totalorder %s2255_s17, 1  ;;  %p113_p7 = scmp.eq.s32.totalorder %s110_s23, 0 }
   0xb   : > { %p2327_p8 = por %p132_p5, %p131_p3  ;;  %p173_p9 = scmp.lt.s32.totalorder %s2255_s17, 3 }
   0xc   : > { %s2333_s25 = scalar_select %p113_p7, %s2243_s14, %s115_s21  }
   0xd   : > { %p174_p10 = pnand %p1502_p6, %p173_p9 }
   0xe   : > { %s1504_s21 = sshll.u32 (!%p174_p10), %s2247_s15, 5  ;;  %s202_s30 = sand.u32 (!%p174_p10), 1, %s2239_s13  }
   0xf   : > { %177 = sbr.rel (%p174_p10) target bundleno = 397 (0x18d), region = 32  ;;  %p206_p11 = scmp.lt.s32.totalorder (!%p174_p10), %s1504_s21, 63 }
  0x10   : > { %s1674_s6 = sshll.u32 (!%p174_p10), %s2247_s15, 11  ;;  %s2570_s11 = scalar_lea.sflag (!%p174_p10), [#allocation3], %s202_s30 }
  0x11   : > { %s2563_s10 = scalar_lea.hbm (!%p174_p10), %s2618_s3, %s1674_s6  ;;  %s2257_s15 = smov (!%p174_p10), [#allocation2]  }
  0x14   : > { %v2051_v0 = vld [vmem:[%s2616_s1 + $0x78] sm:$0xff]   ;;  %v2055_v4 = vld [vmem:[%s2616_s1 + $0x70] sm:$0xff]   ;;  %v2059_v8 = vld [vmem:[%s2616_s1 + $0x68] sm:$0xff]   ;;  %s2629_s21 = smov (!%p206_p11, %s1504_s21), 63 }
  0x15   : > { %v2052_v1 = vld [vmem:[%s2616_s1 + $0xf8] sm:$0xff]   ;;  %1770 = vmatprep.subr.bf16.mxu0 %v2051_v0  ;;  %v2056_v5 = vld [vmem:[%s2616_s1 + $0xf0] sm:$0xff]   ;;  %v2060_v9 = vld [vmem:[%s2616_s1 + $0xe8] sm:$0xff]   ;;  %s1641_s4 = sshll.u32 %s2629_s21, 4 }
  0x16   : > { %v2053_v2 = vld [vmem:[%s2616_s1 + $0x38] sm:$0xff]   ;;  %1882 = vmatprep.subr.bf16.mxu1 %v2052_v1  ;;  %v2057_v6 = vld [vmem:[%s2616_s1 + $0x30] sm:$0xff]   ;;  %v2061_v10 = vld [vmem:[%s2616_s1 + $0x28] sm:$0xff]   ;;  %s2429_s19 = scalar_lea.vmem %s2615_s0, %s1641_s4  ;;  %s1503_s4 = sshll.u32 %s202_s30, 7 }
  0x17   : > { %v2054_v3 = vld [vmem:[%s2616_s1 + $0xb8] sm:$0xff]   ;;  %1771 = vmatpush3.bf16.msra.mxu0 %v2053_v2  ;;  %v2058_v7 = vld [vmem:[%s2616_s1 + $0xb0] sm:$0xff]   ;;  %v2062_v11 = vld [vmem:[%s2616_s1 + $0xa8] sm:$0xff]   ;;  %s2512_s5 = scalar_lea.vmem [#allocation2], %s1503_s4 }
  0x18   : > { %1883 = vmatpush3.bf16.msra.mxu1 %v2054_v3  ;;  %1772 = vmatprep.subr.bf16.mxu0 %v2055_v4  ;;  %v2063_v12 = vld [vmem:[%s2616_s1 + $0x60] sm:$0xff]   ;;  %v2067_v16 = vld [vmem:[%s2616_s1 + $0x58] sm:$0xff]   ;;  %v2071_v20 = vld [vmem:[%s2616_s1 + $0x50] sm:$0xff]   ;;  %s1397_s7 = sshll.u32 %s2512_s5, 4  ;;  %s2565_s7 = int_to_ptr.vmem [resolvable:$true] %s1397_s7 }
  0x19   : > { %1884 = vmatprep.subr.bf16.mxu1 %v2056_v5  ;;  %v2064_v13 = vld [vmem:[%s2616_s1 + $0xe0] sm:$0xff]   ;;  %v2068_v17 = vld [vmem:[%s2616_s1 + $0xd8] sm:$0xff]   ;;  %v2072_v21 = vld [vmem:[%s2616_s1 + $0xd0] sm:$0xff]   ;;  %s2179_s18 = scalar_lea.vmem %s2565_s7, 2048 }
  0x1a   : > { %v2065_v14 = vld [vmem:[%s2616_s1 + $0x20] sm:$0xff]   ;;  %v2069_v18 = vld [vmem:[%s2616_s1 + $0x18] sm:$0xff]   ;;  %v2073_v22 = vld [vmem:[%s2616_s1 + $0x10] sm:$0xff]   ;;  %p2180_p12 = scmp.ne.s32.totalorder %s2565_s7, %s2179_s18 }
  0x1b   : > { %1773 = vmatpush3.bf16.msra.mxu0 %v2057_v6  ;;  %v2066_v15 = vld [vmem:[%s2616_s1 + $0xa0] sm:$0xff]   ;;  %v2070_v19 = vld [vmem:[%s2616_s1 + $0x98] sm:$0xff]   ;;  %v2074_v23 = vld [vmem:[%s2616_s1 + $0x90] sm:$0xff]  }
  0x1c   : > { %1885 = vmatpush3.bf16.msra.mxu1 %v2058_v7  ;;  %1774 = vmatprep.subr.bf16.mxu0 %v2059_v8  ;;  %v2075_v24 = vld [vmem:[%s2616_s1 + $0x48] sm:$0xff]   ;;  %v2079_v28 = vld [vmem:[%s2616_s1 + $0x40] sm:$0xff]   ;;  %p2181_p13 = pnand %p2180_p12, %p2320_p4 }
  0x1d   : > { %1886 = vmatprep.subr.bf16.mxu1 %v2060_v9  ;;  %v2076_v25 = vld [vmem:[%s2616_s1 + $0xc8] sm:$0xff]   ;;  %v2080_v29 = vld [vmem:[%s2616_s1 + $0xc0] sm:$0xff]  }
  0x1e   : > { %v2077_v26 = vld [vmem:[%s2616_s1 + $0x8] sm:$0xff]   ;;  %v2081_v30 = vld [vmem:[%s2616_s1] sm:$0xff]   ;;  %p2182_p0 = pneg %p2181_p13 }
  0x1f   : > { %1775 = vmatpush3.bf16.msra.mxu0 %v2061_v10  ;;  %v2078_v27 = vld [vmem:[%s2616_s1 + $0x88] sm:$0xff]   ;;  %v2082_v31 = vld [vmem:[%s2616_s1 + $0x80] sm:$0xff]  }
  0x20   : > { %1887 = vmatpush3.bf16.msra.mxu1 %v2062_v11  ;;  %1776 = vmatprep.subr.bf16.mxu0 %v2063_v12  ;;  %v2083_v32 = vld [vmem:[%s2429_s19] ss:$16 sps:$4 sm:$0xff]   ;;  %v2085_v33 = vld [vmem:[%s2429_s19 + $0x4] ss:$16 sps:$4 sm:$0xff]   ;;  %v2086_v34 = vld [vmem:[%s2429_s19 + $0x8] ss:$16 sps:$4 sm:$0xff]  }
  0x21   : > { %1888 = vmatprep.subr.bf16.mxu1 %v2064_v13  ;;  %v2088_v35 = vld [vmem:[%s2429_s19 + $0xc] ss:$16 sps:$4 sm:$0xff]   ;;  %900 = vmatprep.mubr.bf16.mxu0 %v2085_v33  ;;  %v2089_v36 = vld [vmem:[%s2429_s19 + $0x24] ss:$16 sps:$4 sm:$0xff]   ;;  %v2093_v38 = vld [vmem:[%s2429_s19 + $0x20] ss:$16 sps:$4 sm:$0xff]  }
  0x22   : > { %1061 = vmatprep.mubr.bf16.mxu1 %v2088_v35  ;;  %v2091_v37 = vld [vmem:[%s2429_s19 + $0x2c] ss:$16 sps:$4 sm:$0xff]   ;;  %v2094_v39 = vld [vmem:[%s2429_s19 + $0x28] ss:$16 sps:$4 sm:$0xff]   ;;  %v2095_v40 = vld [vmem:[%s2429_s19 + $0x44] ss:$16 sps:$4 sm:$0xff]  }
  0x23   : > { %1777 = vmatpush3.bf16.msra.mxu0 %v2065_v14  ;;  %v2097_v41 = vld [vmem:[%s2429_s19 + $0x4c] ss:$16 sps:$4 sm:$0xff]   ;;  %v2099_v42 = vld [vmem:[%s2429_s19 + $0x40] ss:$16 sps:$4 sm:$0xff]   ;;  %v2100_v43 = vld [vmem:[%s2429_s19 + $0x48] ss:$16 sps:$4 sm:$0xff]  }
  0x24   : > { %1889 = vmatpush3.bf16.msra.mxu1 %v2066_v15  ;;  %1778 = vmatprep.subr.bf16.mxu0 %v2067_v16  ;;  %v2101_v44 = vld [vmem:[%s2429_s19 + $0x64] ss:$16 sps:$4 sm:$0xff]   ;;  %v2103_v45 = vld [vmem:[%s2429_s19 + $0x6c] ss:$16 sps:$4 sm:$0xff]   ;;  %v2105_v46 = vld [vmem:[%s2429_s19 + $0x60] ss:$16 sps:$4 sm:$0xff]  }
  0x25   : > { %1890 = vmatprep.subr.bf16.mxu1 %v2068_v17  ;;  %v2106_v47 = vld [vmem:[%s2429_s19 + $0x68] ss:$16 sps:$4 sm:$0xff]   ;;  %v2107_v48 = vld [vmem:[%s2429_s19 + $0x84] ss:$16 sps:$4 sm:$0xff]   ;;  %v2109_v49 = vld [vmem:[%s2429_s19 + $0x8c] ss:$16 sps:$4 sm:$0xff]  }
  0x26   : > { %v2111_v50 = vld [vmem:[%s2429_s19 + $0x80] ss:$16 sps:$4 sm:$0xff]   ;;  %v2112_v51 = vld [vmem:[%s2429_s19 + $0x88] ss:$16 sps:$4 sm:$0xff]   ;;  %v2113_v52 = vld [vmem:[%s2429_s19 + $0xa4] ss:$16 sps:$4 sm:$0xff]  }
  0x27   : > { %1779 = vmatpush3.bf16.msra.mxu0 %v2069_v18  ;;  %v2115_v53 = vld [vmem:[%s2429_s19 + $0xac] ss:$16 sps:$4 sm:$0xff]   ;;  %v2117_v54 = vld [vmem:[%s2429_s19 + $0xa0] ss:$16 sps:$4 sm:$0xff]   ;;  %v2118_v55 = vld [vmem:[%s2429_s19 + $0xa8] ss:$16 sps:$4 sm:$0xff]  }
  0x28   : > { %1891 = vmatpush3.bf16.msra.mxu1 %v2070_v19  ;;  %1780 = vmatprep.subr.bf16.mxu0 %v2071_v20  ;;  %v2119_v56 = vld [vmem:[%s2429_s19 + $0xc4] ss:$16 sps:$4 sm:$0xff]   ;;  %v2121_v57 = vld [vmem:[%s2429_s19 + $0xcc] ss:$16 sps:$4 sm:$0xff]   ;;  %v2123_v58 = vld [vmem:[%s2429_s19 + $0xc0] ss:$16 sps:$4 sm:$0xff]  }
  0x29   : > { %1892 = vmatprep.subr.bf16.mxu1 %v2072_v21  ;;  %v2124_v59 = vld [vmem:[%s2429_s19 + $0xc8] ss:$16 sps:$4 sm:$0xff]   ;;  %v2125_v60 = vld [vmem:[%s2429_s19 + $0xe4] ss:$16 sps:$4 sm:$0xff]   ;;  %v2127_v61 = vld [vmem:[%s2429_s19 + $0xec] ss:$16 sps:$4 sm:$0xff]  }
  0x2a   : > { %v2129_v62 = vld [vmem:[%s2429_s19 + $0xe0] ss:$16 sps:$4 sm:$0xff]   ;;  %v2130_v63 = vld [vmem:[%s2429_s19 + $0xe8] ss:$16 sps:$4 sm:$0xff]   ;;  %v2131_v0 = vld [vmem:[%s2429_s19 + $0x104] ss:$16 sps:$4 sm:$0xff]  }
  0x2b   : > { %1781 = vmatpush3.bf16.msra.mxu0 %v2073_v22  ;;  %v2133_v1 = vld [vmem:[%s2429_s19 + $0x10c] ss:$16 sps:$4 sm:$0xff]   ;;  %v2135_v2 = vld [vmem:[%s2429_s19 + $0x100] ss:$16 sps:$4 sm:$0xff]   ;;  %v2136_v3 = vld [vmem:[%s2429_s19 + $0x108] ss:$16 sps:$4 sm:$0xff]  }
  0x2c   : > { %1893 = vmatpush3.bf16.msra.mxu1 %v2074_v23  ;;  %1782 = vmatprep.subr.bf16.mxu0 %v2075_v24  ;;  %v2137_v4 = vld [vmem:[%s2429_s19 + $0x124] ss:$16 sps:$4 sm:$0xff]   ;;  %v2139_v5 = vld [vmem:[%s2429_s19 + $0x12c] ss:$16 sps:$4 sm:$0xff]   ;;  %v2141_v6 = vld [vmem:[%s2429_s19 + $0x120] ss:$16 sps:$4 sm:$0xff]  }
  0x2d   : > { %1894 = vmatprep.subr.bf16.mxu1 %v2076_v25  ;;  %v2142_v7 = vld [vmem:[%s2429_s19 + $0x128] ss:$16 sps:$4 sm:$0xff]   ;;  %v2143_v8 = vld [vmem:[%s2429_s19 + $0x144] ss:$16 sps:$4 sm:$0xff]   ;;  %v2145_v9 = vld [vmem:[%s2429_s19 + $0x14c] ss:$16 sps:$4 sm:$0xff]  }
  0x2e   : > { %v2147_v10 = vld [vmem:[%s2429_s19 + $0x140] ss:$16 sps:$4 sm:$0xff]   ;;  %v2148_v11 = vld [vmem:[%s2429_s19 + $0x148] ss:$16 sps:$4 sm:$0xff]   ;;  %v2149_v12 = vld [vmem:[%s2429_s19 + $0x164] ss:$16 sps:$4 sm:$0xff]  }
  0x2f   : > { %1783 = vmatpush3.bf16.msra.mxu0 %v2077_v26  ;;  %v2151_v13 = vld [vmem:[%s2429_s19 + $0x16c] ss:$16 sps:$4 sm:$0xff]   ;;  %v2153_v14 = vld [vmem:[%s2429_s19 + $0x160] ss:$16 sps:$4 sm:$0xff]   ;;  %v2154_v15 = vld [vmem:[%s2429_s19 + $0x168] ss:$16 sps:$4 sm:$0xff]  }
  0x30   : > { %1895 = vmatpush3.bf16.msra.mxu1 %v2078_v27  ;;  %1784 = vmatprep.subr.bf16.mxu0 %v2079_v28  ;;  %v2155_v16 = vld [vmem:[%s2429_s19 + $0x184] ss:$16 sps:$4 sm:$0xff]   ;;  %v2157_v17 = vld [vmem:[%s2429_s19 + $0x18c] ss:$16 sps:$4 sm:$0xff]   ;;  %v2159_v18 = vld [vmem:[%s2429_s19 + $0x180] ss:$16 sps:$4 sm:$0xff]  }
  0x31   : > { %1896 = vmatprep.subr.bf16.mxu1 %v2080_v29  ;;  %v2160_v19 = vld [vmem:[%s2429_s19 + $0x188] ss:$16 sps:$4 sm:$0xff]   ;;  %v2161_v20 = vld [vmem:[%s2429_s19 + $0x1a4] ss:$16 sps:$4 sm:$0xff]   ;;  %v2163_v21 = vld [vmem:[%s2429_s19 + $0x1ac] ss:$16 sps:$4 sm:$0xff]  }
  0x32   : > { %v2165_v22 = vld [vmem:[%s2429_s19 + $0x1a0] ss:$16 sps:$4 sm:$0xff]   ;;  %v2166_v23 = vld [vmem:[%s2429_s19 + $0x1a8] ss:$16 sps:$4 sm:$0xff]   ;;  %v2167_v24 = vld [vmem:[%s2429_s19 + $0x1c4] ss:$16 sps:$4 sm:$0xff]  }
  0x33   : > { %1785 = vmatpush3.bf16.msra.mxu0 %v2081_v30  ;;  %v2169_v25 = vld [vmem:[%s2429_s19 + $0x1cc] ss:$16 sps:$4 sm:$0xff]   ;;  %v2171_v26 = vld [vmem:[%s2429_s19 + $0x1c0] ss:$16 sps:$4 sm:$0xff]   ;;  %v2172_v27 = vld [vmem:[%s2429_s19 + $0x1c8] ss:$16 sps:$4 sm:$0xff]  }
  0x34   : > { %1897 = vmatpush3.bf16.msra.mxu1 %v2082_v31  ;;  %v2173_v28 = vld [vmem:[%s2429_s19 + $0x1e4] ss:$16 sps:$4 sm:$0xff]   ;;  %v2175_v29 = vld [vmem:[%s2429_s19 + $0x1ec] ss:$16 sps:$4 sm:$0xff]   ;;  %v2177_v30 = vld [vmem:[%s2429_s19 + $0x1e0] ss:$16 sps:$4 sm:$0xff]  }
  0x35   : > { %v2178_v31 = vld [vmem:[%s2429_s19 + $0x1e8] ss:$16 sps:$4 sm:$0xff]   ;;  %s2183_s19 = sshll.u32 %s2257_s15, 4  ;;  %s2184_s19 = int_to_ptr.vmem [resolvable:$false] %s2183_s19 }
  0x36   : > { %901 = vmatmul.mubr.bf16.vlgmr.msra.gmra.mxu0 %v2083_v32  ;;  %s2185_s21 = scalar_lea.vmem %s2184_s19, 4096  ;;  %p2186_p1 = scmp.lt.s32.totalorder %s2565_s7, %s2184_s19 }
  0x37   : > { %1062 = vmatmul.mubr.bf16.vlgmr.msra.gmra.mxu1 %v2086_v34  ;;  %908 = vmatprep.mubr.bf16.mxu0 %v2089_v36  ;;  %v2504_v34 = vld [vmem:[%s2617_s2] ss:$0 sm:$0xff]  ;;  %p2187_p2 = scmp.lt.s32.totalorder %s2185_s21, %s2179_s18 }
  0x38   : > { %1069 = vmatprep.mubr.bf16.mxu1 %v2091_v37 }
  0x39   : > { %p2188_p3 = por %p2187_p2, %p2186_p1 }
  0x3b   : > { %p2189_p5 = pnand %p2188_p3, %p2182_p0 }
  0x3e   : > { %909 = vmatmul.mubr.bf16.gmra.mxu0 %v2093_v38 }
  0x3f   : > { %1070 = vmatmul.mubr.bf16.gmra.mxu1 %v2094_v39  ;;  %916 = vmatprep.mubr.bf16.mxu0 %v2095_v40 }
  0x40   : > { %1077 = vmatprep.mubr.bf16.mxu1 %v2097_v41 }
  0x46   : > { %917 = vmatmul.mubr.bf16.gmra.mxu0 %v2099_v42 }
  0x47   : > { %1078 = vmatmul.mubr.bf16.gmra.mxu1 %v2100_v43  ;;  %924 = vmatprep.mubr.bf16.mxu0 %v2101_v44 }
  0x48   : > { %1085 = vmatprep.mubr.bf16.mxu1 %v2103_v45 }
  0x4e   : > { %925 = vmatmul.mubr.bf16.gmra.mxu0 %v2105_v46 }
  0x4f   : > { %1086 = vmatmul.mubr.bf16.gmra.mxu1 %v2106_v47  ;;  %932 = vmatprep.mubr.bf16.mxu0 %v2107_v48 }
  0x50   : > { %1093 = vmatprep.mubr.bf16.mxu1 %v2109_v49 }
  0x56   : > { %933 = vmatmul.mubr.bf16.gmra.mxu0 %v2111_v50 }
  0x57   : > { %1094 = vmatmul.mubr.bf16.gmra.mxu1 %v2112_v51  ;;  %940 = vmatprep.mubr.bf16.mxu0 %v2113_v52 }
  0x58   : > { %1101 = vmatprep.mubr.bf16.mxu1 %v2115_v53 }
  0x5e   : > { %941 = vmatmul.mubr.bf16.gmra.mxu0 %v2117_v54 }
  0x5f   : > { %1102 = vmatmul.mubr.bf16.gmra.mxu1 %v2118_v55  ;;  %948 = vmatprep.mubr.bf16.mxu0 %v2119_v56 }
  0x60   : > { %1109 = vmatprep.mubr.bf16.mxu1 %v2121_v57 }
  0x66   : > { %949 = vmatmul.mubr.bf16.gmra.mxu0 %v2123_v58 }
  0x67   : > { %1110 = vmatmul.mubr.bf16.gmra.mxu1 %v2124_v59  ;;  %956 = vmatprep.mubr.bf16.mxu0 %v2125_v60 }
  0x68   : > { %1117 = vmatprep.mubr.bf16.mxu1 %v2127_v61 }
  0x6e   : > { %957 = vmatmul.mubr.bf16.gmra.mxu0 %v2129_v62 }
  0x6f   : > { %1118 = vmatmul.mubr.bf16.gmra.mxu1 %v2130_v63  ;;  %964 = vmatprep.mubr.bf16.mxu0 %v2131_v0 }
  0x70   : > { %1125 = vmatprep.mubr.bf16.mxu1 %v2133_v1 }
  0x76   : > { %965 = vmatmul.mubr.bf16.gmra.mxu0 %v2135_v2 }
  0x77   : > { %1126 = vmatmul.mubr.bf16.gmra.mxu1 %v2136_v3  ;;  %972 = vmatprep.mubr.bf16.mxu0 %v2137_v4 }
  0x78   : > { %1133 = vmatprep.mubr.bf16.mxu1 %v2139_v5 }
  0x7e   : > { %973 = vmatmul.mubr.bf16.gmra.mxu0 %v2141_v6 }
  0x7f   : > { %1134 = vmatmul.mubr.bf16.gmra.mxu1 %v2142_v7  ;;  %980 = vmatprep.mubr.bf16.mxu0 %v2143_v8 }
  0x80   : > { %1141 = vmatprep.mubr.bf16.mxu1 %v2145_v9 }
  0x86   : > { %981 = vmatmul.mubr.bf16.gmra.mxu0 %v2147_v10 }
  0x87   : > { %1142 = vmatmul.mubr.bf16.gmra.mxu1 %v2148_v11  ;;  %988 = vmatprep.mubr.bf16.mxu0 %v2149_v12 }
  0x88   : > { %1149 = vmatprep.mubr.bf16.mxu1 %v2151_v13 }
  0x8e   : > { %989 = vmatmul.mubr.bf16.gmra.mxu0 %v2153_v14 }
  0x8f   : > { %1150 = vmatmul.mubr.bf16.gmra.mxu1 %v2154_v15  ;;  %996 = vmatprep.mubr.bf16.mxu0 %v2155_v16 }
  0x90   : > { %1157 = vmatprep.mubr.bf16.mxu1 %v2157_v17 }
  0x96   : > { %997 = vmatmul.mubr.bf16.gmra.mxu0 %v2159_v18 }
  0x97   : > { %1158 = vmatmul.mubr.bf16.gmra.mxu1 %v2160_v19  ;;  %1004 = vmatprep.mubr.bf16.mxu0 %v2161_v20 }
  0x98   : > { %1165 = vmatprep.mubr.bf16.mxu1 %v2163_v21 }
  0x9e   : > { %1005 = vmatmul.mubr.bf16.gmra.mxu0 %v2165_v22 }
  0x9f   : > { %1166 = vmatmul.mubr.bf16.gmra.mxu1 %v2166_v23  ;;  %1012 = vmatprep.mubr.bf16.mxu0 %v2167_v24 }
  0xa0   : > { %1173 = vmatprep.mubr.bf16.mxu1 %v2169_v25 }
  0xa6   : > { %1013 = vmatmul.mubr.bf16.gmra.mxu0 %v2171_v26 }
  0xa7   : > { %1174 = vmatmul.mubr.bf16.gmra.mxu1 %v2172_v27  ;;  %1020 = vmatprep.mubr.bf16.mxu0 %v2173_v28 }
  0xa8   : > { %1181 = vmatprep.mubr.bf16.mxu1 %v2175_v29 }
  0xae   : > { %1021 = vmatmul.mubr.bf16.gmra.mxu0 %v2177_v30 }
  0xaf   : > { %1182 = vmatmul.mubr.bf16.gmra.mxu1 %v2178_v31 }
  0xf6   : > { %v1786_v32 = vpop.f32.mrf.mxu0 }
  0xf7   : > { %v1898_v33 = vpop.f32.mrf.mxu1 }
  0xf8   : > { %v1787_v35 = vpop.f32.mrf.mxu0 }
  0xf9   : > { %v1788_v36 = vadd.f32 %v1787_v35, %v1786_v32  ;;  %v1899_v37 = vpop.f32.mrf.mxu1 }
  0xfa   : > { %v1789_v38 = vpop.f32.mrf.mxu0  ;;  %v1900_v42 = vadd.f32 %v1899_v37, %v1898_v33 }
  0xfb   : > { %v903_v39 = vadd.f32 %v1788_v36, %v2504_v34  ;;  %v1901_v40 = vpop.f32.mrf.mxu1 }
  0xfc   : > { %v1790_v41 = vpop.f32.mrf.mxu0 }
  0xfd   : > { %v1791_v43 = vadd.f32 %v1790_v41, %v1789_v38  ;;  %v1902_v44 = vpop.f32.mrf.mxu1  ;;  %v1064_v46 = vadd.f32 %v1900_v42, %v903_v39 }
  0xfe   : > { %v1792_v45 = vpop.f32.mrf.mxu0  ;;  %v1903_v48 = vadd.f32 %v1902_v44, %v1901_v40 }
  0xff   : > { %v906_v47 = vadd.f32 %v1791_v43, %v2504_v34  ;;  %v1904_v49 = vpop.f32.mrf.mxu1  ;;  %v1190_v55 = vmax.f32 %v1064_v46, 0.0 }
 0x100   : > { %v1793_v50 = vpop.f32.mrf.mxu0 }
 0x101   : > { %v1067_v51 = vadd.f32 %v1903_v48, %v906_v47  ;;  %v1794_v52 = vadd.f32 %v1793_v50, %v1792_v45  ;;  %v1905_v53 = vpop.f32.mrf.mxu1 }
 0x102   : > { %v1795_v54 = vpop.f32.mrf.mxu0  ;;  %v1906_v61 = vadd.f32 %v1905_v53, %v1904_v49 }
 0x103   : > { %v1191_v56 = vmax.f32 %v1067_v51, 0.0  ;;  %v911_v57 = vadd.f32 %v1794_v52, %v2504_v34  ;;  %v1907_v58 = vpop.f32.mrf.mxu1 }
 0x104   : > { %v1796_v59 = vpop.f32.mrf.mxu0 }
 0x105   : > { %v1678_v60 = vpack.c.bf16 %v1191_v56, %v1190_v55  ;;  %v1797_v62 = vadd.f32 %v1796_v59, %v1795_v54  ;;  %v1908_v63 = vpop.f32.mrf.mxu1  ;;  %v1072_v1 = vadd.f32 %v1906_v61, %v911_v57 }
 0x106   : > { %v1798_v0 = vpop.f32.mrf.mxu0  ;;  %v1909_v3 = vadd.f32 %v1908_v63, %v1907_v58 }
 0x107   : > { %1679 = vst [vmem:[%s2512_s5] sm:$0xff] %v1678_v60   ;;  %v914_v2 = vadd.f32 %v1797_v62, %v2504_v34  ;;  %v1910_v4 = vpop.f32.mrf.mxu1  ;;  %v1192_v10 = vmax.f32 %v1072_v1, 0.0 }
 0x108   : > { %v1799_v5 = vpop.f32.mrf.mxu0 }
 0x109   : > { %v1075_v6 = vadd.f32 %v1909_v3, %v914_v2  ;;  %v1800_v7 = vadd.f32 %v1799_v5, %v1798_v0  ;;  %v1911_v8 = vpop.f32.mrf.mxu1 }
 0x10a   : > { %v1801_v9 = vpop.f32.mrf.mxu0  ;;  %v1912_v16 = vadd.f32 %v1911_v8, %v1910_v4 }
 0x10b   : > { %v1193_v11 = vmax.f32 %v1075_v6, 0.0  ;;  %v919_v12 = vadd.f32 %v1800_v7, %v2504_v34  ;;  %v1913_v13 = vpop.f32.mrf.mxu1 }
 0x10c   : > { %v1802_v14 = vpop.f32.mrf.mxu0 }
 0x10d   : > { %v1683_v15 = vpack.c.bf16 %v1193_v11, %v1192_v10  ;;  %v1803_v17 = vadd.f32 %v1802_v14, %v1801_v9  ;;  %v1914_v18 = vpop.f32.mrf.mxu1  ;;  %v1080_v20 = vadd.f32 %v1912_v16, %v919_v12 }
 0x10e   : > { %v1804_v19 = vpop.f32.mrf.mxu0  ;;  %v1915_v22 = vadd.f32 %v1914_v18, %v1913_v13 }
 0x10f   : > { %1755 = vst [vmem:[%s2512_s5 + $0x8] sm:$0xff] %v1683_v15   ;;  %v922_v21 = vadd.f32 %v1803_v17, %v2504_v34  ;;  %v1916_v23 = vpop.f32.mrf.mxu1  ;;  %v1194_v29 = vmax.f32 %v1080_v20, 0.0 }
 0x110   : > { %v1805_v24 = vpop.f32.mrf.mxu0 }
 0x111   : > { %v1083_v25 = vadd.f32 %v1915_v22, %v922_v21  ;;  %v1806_v26 = vadd.f32 %v1805_v24, %v1804_v19  ;;  %v1917_v27 = vpop.f32.mrf.mxu1 }
 0x112   : > { %v1807_v28 = vpop.f32.mrf.mxu0  ;;  %v1918_v36 = vadd.f32 %v1917_v27, %v1916_v23 }
 0x113   : > { %v1195_v30 = vmax.f32 %v1083_v25, 0.0  ;;  %v927_v31 = vadd.f32 %v1806_v26, %v2504_v34  ;;  %v1919_v32 = vpop.f32.mrf.mxu1 }
 0x114   : > { %v1808_v33 = vpop.f32.mrf.mxu0 }
 0x115   : > { %v1688_v35 = vpack.c.bf16 %v1195_v30, %v1194_v29  ;;  %v1809_v37 = vadd.f32 %v1808_v33, %v1807_v28  ;;  %v1920_v38 = vpop.f32.mrf.mxu1  ;;  %v1088_v40 = vadd.f32 %v1918_v36, %v927_v31 }
 0x116   : > { %v1810_v39 = vpop.f32.mrf.mxu0  ;;  %v1921_v42 = vadd.f32 %v1920_v38, %v1919_v32 }
 0x117   : > { %1756 = vst [vmem:[%s2512_s5 + $0x10] sm:$0xff] %v1688_v35   ;;  %v930_v41 = vadd.f32 %v1809_v37, %v2504_v34  ;;  %v1922_v43 = vpop.f32.mrf.mxu1  ;;  %v1196_v49 = vmax.f32 %v1088_v40, 0.0 }
 0x118   : > { %v1811_v44 = vpop.f32.mrf.mxu0 }
 0x119   : > { %v1091_v45 = vadd.f32 %v1921_v42, %v930_v41  ;;  %v1812_v46 = vadd.f32 %v1811_v44, %v1810_v39  ;;  %v1923_v47 = vpop.f32.mrf.mxu1 }
 0x11a   : > { %v1813_v48 = vpop.f32.mrf.mxu0  ;;  %v1924_v55 = vadd.f32 %v1923_v47, %v1922_v43 }
 0x11b   : > { %v1197_v50 = vmax.f32 %v1091_v45, 0.0  ;;  %v935_v51 = vadd.f32 %v1812_v46, %v2504_v34  ;;  %v1925_v52 = vpop.f32.mrf.mxu1 }
 0x11c   : > { %v1814_v53 = vpop.f32.mrf.mxu0 }
 0x11d   : > { %v1693_v54 = vpack.c.bf16 %v1197_v50, %v1196_v49  ;;  %v1815_v56 = vadd.f32 %v1814_v53, %v1813_v48  ;;  %v1926_v57 = vpop.f32.mrf.mxu1  ;;  %v1096_v59 = vadd.f32 %v1924_v55, %v935_v51 }
 0x11e   : > { %v1816_v58 = vpop.f32.mrf.mxu0  ;;  %v1927_v61 = vadd.f32 %v1926_v57, %v1925_v52 }
 0x11f   : > { %1757 = vst [vmem:[%s2512_s5 + $0x18] sm:$0xff] %v1693_v54   ;;  %v938_v60 = vadd.f32 %v1815_v56, %v2504_v34  ;;  %v1928_v62 = vpop.f32.mrf.mxu1  ;;  %v1198_v4 = vmax.f32 %v1096_v59, 0.0 }
 0x120   : > { %v1817_v63 = vpop.f32.mrf.mxu0 }
 0x121   : > { %v1099_v0 = vadd.f32 %v1927_v61, %v938_v60  ;;  %v1818_v1 = vadd.f32 %v1817_v63, %v1816_v58  ;;  %v1929_v2 = vpop.f32.mrf.mxu1 }
 0x122   : > { %v1819_v3 = vpop.f32.mrf.mxu0  ;;  %v1930_v10 = vadd.f32 %v1929_v2, %v1928_v62 }
 0x123   : > { %v1199_v5 = vmax.f32 %v1099_v0, 0.0  ;;  %v943_v6 = vadd.f32 %v1818_v1, %v2504_v34  ;;  %v1931_v7 = vpop.f32.mrf.mxu1 }
 0x124   : > { %v1820_v8 = vpop.f32.mrf.mxu0 }
 0x125   : > { %v1698_v9 = vpack.c.bf16 %v1199_v5, %v1198_v4  ;;  %v1821_v11 = vadd.f32 %v1820_v8, %v1819_v3  ;;  %v1932_v12 = vpop.f32.mrf.mxu1  ;;  %v1104_v14 = vadd.f32 %v1930_v10, %v943_v6 }
 0x126   : > { %v1822_v13 = vpop.f32.mrf.mxu0  ;;  %v1933_v16 = vadd.f32 %v1932_v12, %v1931_v7 }
 0x127   : > { %1758 = vst [vmem:[%s2512_s5 + $0x20] sm:$0xff] %v1698_v9   ;;  %v946_v15 = vadd.f32 %v1821_v11, %v2504_v34  ;;  %v1934_v17 = vpop.f32.mrf.mxu1  ;;  %v1200_v23 = vmax.f32 %v1104_v14, 0.0 }
 0x128   : > { %v1823_v18 = vpop.f32.mrf.mxu0 }
 0x129   : > { %v1107_v19 = vadd.f32 %v1933_v16, %v946_v15  ;;  %v1824_v20 = vadd.f32 %v1823_v18, %v1822_v13  ;;  %v1935_v21 = vpop.f32.mrf.mxu1 }
 0x12a   : > { %v1825_v22 = vpop.f32.mrf.mxu0  ;;  %v1936_v29 = vadd.f32 %v1935_v21, %v1934_v17 }
 0x12b   : > { %v1201_v24 = vmax.f32 %v1107_v19, 0.0  ;;  %v951_v25 = vadd.f32 %v1824_v20, %v2504_v34  ;;  %v1937_v26 = vpop.f32.mrf.mxu1 }
 0x12c   : > { %v1826_v27 = vpop.f32.mrf.mxu0 }
 0x12d   : > { %v1703_v28 = vpack.c.bf16 %v1201_v24, %v1200_v23  ;;  %v1827_v30 = vadd.f32 %v1826_v27, %v1825_v22  ;;  %v1938_v31 = vpop.f32.mrf.mxu1  ;;  %v1112_v33 = vadd.f32 %v1936_v29, %v951_v25 }
 0x12e   : > { %v1828_v32 = vpop.f32.mrf.mxu0  ;;  %v1939_v36 = vadd.f32 %v1938_v31, %v1937_v26 }
 0x12f   : > { %1759 = vst [vmem:[%s2512_s5 + $0x28] sm:$0xff] %v1703_v28   ;;  %v954_v35 = vadd.f32 %v1827_v30, %v2504_v34  ;;  %v1940_v37 = vpop.f32.mrf.mxu1  ;;  %v1202_v43 = vmax.f32 %v1112_v33, 0.0 }
 0x130   : > { %v1829_v38 = vpop.f32.mrf.mxu0 }
 0x131   : > { %v1115_v39 = vadd.f32 %v1939_v36, %v954_v35  ;;  %v1830_v40 = vadd.f32 %v1829_v38, %v1828_v32  ;;  %v1941_v41 = vpop.f32.mrf.mxu1 }
 0x132   : > { %v1831_v42 = vpop.f32.mrf.mxu0  ;;  %v1942_v49 = vadd.f32 %v1941_v41, %v1940_v37 }
 0x133   : > { %v1203_v44 = vmax.f32 %v1115_v39, 0.0  ;;  %v959_v45 = vadd.f32 %v1830_v40, %v2504_v34  ;;  %v1943_v46 = vpop.f32.mrf.mxu1 }
 0x134   : > { %v1832_v47 = vpop.f32.mrf.mxu0 }
 0x135   : > { %v1708_v48 = vpack.c.bf16 %v1203_v44, %v1202_v43  ;;  %v1833_v50 = vadd.f32 %v1832_v47, %v1831_v42  ;;  %v1944_v51 = vpop.f32.mrf.mxu1  ;;  %v1120_v53 = vadd.f32 %v1942_v49, %v959_v45 }
 0x136   : > { %v1834_v52 = vpop.f32.mrf.mxu0  ;;  %v1945_v55 = vadd.f32 %v1944_v51, %v1943_v46 }
 0x137   : > { %1760 = vst [vmem:[%s2512_s5 + $0x30] sm:$0xff] %v1708_v48   ;;  %v962_v54 = vadd.f32 %v1833_v50, %v2504_v34  ;;  %v1946_v56 = vpop.f32.mrf.mxu1  ;;  %v1204_v62 = vmax.f32 %v1120_v53, 0.0 }
 0x138   : > { %v1835_v57 = vpop.f32.mrf.mxu0 }
 0x139   : > { %v1123_v58 = vadd.f32 %v1945_v55, %v962_v54  ;;  %v1836_v59 = vadd.f32 %v1835_v57, %v1834_v52  ;;  %v1947_v60 = vpop.f32.mrf.mxu1 }
 0x13a   : > { %v1837_v61 = vpop.f32.mrf.mxu0  ;;  %v1948_v4 = vadd.f32 %v1947_v60, %v1946_v56 }
 0x13b   : > { %v1205_v63 = vmax.f32 %v1123_v58, 0.0  ;;  %v967_v0 = vadd.f32 %v1836_v59, %v2504_v34  ;;  %v1949_v1 = vpop.f32.mrf.mxu1 }
 0x13c   : > { %v1838_v2 = vpop.f32.mrf.mxu0 }
 0x13d   : > { %v1713_v3 = vpack.c.bf16 %v1205_v63, %v1204_v62  ;;  %v1839_v5 = vadd.f32 %v1838_v2, %v1837_v61  ;;  %v1950_v6 = vpop.f32.mrf.mxu1  ;;  %v1128_v8 = vadd.f32 %v1948_v4, %v967_v0 }
 0x13e   : > { %v1840_v7 = vpop.f32.mrf.mxu0  ;;  %v1951_v10 = vadd.f32 %v1950_v6, %v1949_v1 }
 0x13f   : > { %1761 = vst [vmem:[%s2512_s5 + $0x38] sm:$0xff] %v1713_v3   ;;  %v970_v9 = vadd.f32 %v1839_v5, %v2504_v34  ;;  %v1952_v11 = vpop.f32.mrf.mxu1  ;;  %v1206_v17 = vmax.f32 %v1128_v8, 0.0 }
 0x140   : > { %v1841_v12 = vpop.f32.mrf.mxu0 }
 0x141   : > { %v1131_v13 = vadd.f32 %v1951_v10, %v970_v9  ;;  %v1842_v14 = vadd.f32 %v1841_v12, %v1840_v7  ;;  %v1953_v15 = vpop.f32.mrf.mxu1 }
 0x142   : > { %v1843_v16 = vpop.f32.mrf.mxu0  ;;  %v1954_v23 = vadd.f32 %v1953_v15, %v1952_v11 }
 0x143   : > { %v1207_v18 = vmax.f32 %v1131_v13, 0.0  ;;  %v975_v19 = vadd.f32 %v1842_v14, %v2504_v34  ;;  %v1955_v20 = vpop.f32.mrf.mxu1 }
 0x144   : > { %v1844_v21 = vpop.f32.mrf.mxu0 }
 0x145   : > { %v1718_v22 = vpack.c.bf16 %v1207_v18, %v1206_v17  ;;  %v1845_v24 = vadd.f32 %v1844_v21, %v1843_v16  ;;  %v1956_v25 = vpop.f32.mrf.mxu1  ;;  %v1136_v27 = vadd.f32 %v1954_v23, %v975_v19 }
 0x146   : > { %v1846_v26 = vpop.f32.mrf.mxu0  ;;  %v1957_v29 = vadd.f32 %v1956_v25, %v1955_v20 }
 0x147   : > { %1762 = vst [vmem:[%s2512_s5 + $0x40] sm:$0xff] %v1718_v22   ;;  %v978_v28 = vadd.f32 %v1845_v24, %v2504_v34  ;;  %v1958_v30 = vpop.f32.mrf.mxu1  ;;  %v1208_v37 = vmax.f32 %v1136_v27, 0.0 }
 0x148   : > { %v1847_v31 = vpop.f32.mrf.mxu0 }
 0x149   : > { %v1139_v32 = vadd.f32 %v1957_v29, %v978_v28  ;;  %v1848_v33 = vadd.f32 %v1847_v31, %v1846_v26  ;;  %v1959_v35 = vpop.f32.mrf.mxu1 }
 0x14a   : > { %v1849_v36 = vpop.f32.mrf.mxu0  ;;  %v1960_v43 = vadd.f32 %v1959_v35, %v1958_v30 }
 0x14b   : > { %v1209_v38 = vmax.f32 %v1139_v32, 0.0  ;;  %v983_v39 = vadd.f32 %v1848_v33, %v2504_v34  ;;  %v1961_v40 = vpop.f32.mrf.mxu1 }
 0x14c   : > { %v1850_v41 = vpop.f32.mrf.mxu0 }
 0x14d   : > { %v1723_v42 = vpack.c.bf16 %v1209_v38, %v1208_v37  ;;  %v1851_v44 = vadd.f32 %v1850_v41, %v1849_v36  ;;  %v1962_v45 = vpop.f32.mrf.mxu1  ;;  %v1144_v47 = vadd.f32 %v1960_v43, %v983_v39 }
 0x14e   : > { %v1852_v46 = vpop.f32.mrf.mxu0  ;;  %v1963_v49 = vadd.f32 %v1962_v45, %v1961_v40 }
 0x14f   : > { %1763 = vst [vmem:[%s2512_s5 + $0x48] sm:$0xff] %v1723_v42   ;;  %v986_v48 = vadd.f32 %v1851_v44, %v2504_v34  ;;  %v1964_v50 = vpop.f32.mrf.mxu1  ;;  %v1210_v56 = vmax.f32 %v1144_v47, 0.0 }
 0x150   : > { %v1853_v51 = vpop.f32.mrf.mxu0 }
 0x151   : > { %v1147_v52 = vadd.f32 %v1963_v49, %v986_v48  ;;  %v1854_v53 = vadd.f32 %v1853_v51, %v1852_v46  ;;  %v1965_v54 = vpop.f32.mrf.mxu1 }
 0x152   : > { %v1855_v55 = vpop.f32.mrf.mxu0  ;;  %v1966_v62 = vadd.f32 %v1965_v54, %v1964_v50 }
 0x153   : > { %v1211_v57 = vmax.f32 %v1147_v52, 0.0  ;;  %v991_v58 = vadd.f32 %v1854_v53, %v2504_v34  ;;  %v1967_v59 = vpop.f32.mrf.mxu1 }
 0x154   : > { %v1856_v60 = vpop.f32.mrf.mxu0 }
 0x155   : > { %v1728_v61 = vpack.c.bf16 %v1211_v57, %v1210_v56  ;;  %v1857_v63 = vadd.f32 %v1856_v60, %v1855_v55  ;;  %v1968_v0 = vpop.f32.mrf.mxu1  ;;  %v1152_v2 = vadd.f32 %v1966_v62, %v991_v58 }
 0x156   : > { %v1858_v1 = vpop.f32.mrf.mxu0  ;;  %v1969_v4 = vadd.f32 %v1968_v0, %v1967_v59 }
 0x157   : > { %1764 = vst [vmem:[%s2512_s5 + $0x50] sm:$0xff] %v1728_v61   ;;  %v994_v3 = vadd.f32 %v1857_v63, %v2504_v34  ;;  %v1970_v5 = vpop.f32.mrf.mxu1  ;;  %v1212_v11 = vmax.f32 %v1152_v2, 0.0 }
 0x158   : > { %v1859_v6 = vpop.f32.mrf.mxu0 }
 0x159   : > { %v1155_v7 = vadd.f32 %v1969_v4, %v994_v3  ;;  %v1860_v8 = vadd.f32 %v1859_v6, %v1858_v1  ;;  %v1971_v9 = vpop.f32.mrf.mxu1 }
 0x15a   : > { %v1861_v10 = vpop.f32.mrf.mxu0  ;;  %v1972_v17 = vadd.f32 %v1971_v9, %v1970_v5 }
 0x15b   : > { %v1213_v12 = vmax.f32 %v1155_v7, 0.0  ;;  %v999_v13 = vadd.f32 %v1860_v8, %v2504_v34  ;;  %v1973_v14 = vpop.f32.mrf.mxu1 }
 0x15c   : > { %v1862_v15 = vpop.f32.mrf.mxu0 }
 0x15d   : > { %v1733_v16 = vpack.c.bf16 %v1213_v12, %v1212_v11  ;;  %v1863_v18 = vadd.f32 %v1862_v15, %v1861_v10  ;;  %v1974_v19 = vpop.f32.mrf.mxu1  ;;  %v1160_v21 = vadd.f32 %v1972_v17, %v999_v13 }
 0x15e   : > { %v1864_v20 = vpop.f32.mrf.mxu0  ;;  %v1975_v23 = vadd.f32 %v1974_v19, %v1973_v14 }
 0x15f   : > { %1765 = vst [vmem:[%s2512_s5 + $0x58] sm:$0xff] %v1733_v16   ;;  %v1002_v22 = vadd.f32 %v1863_v18, %v2504_v34  ;;  %v1976_v24 = vpop.f32.mrf.mxu1  ;;  %v1214_v30 = vmax.f32 %v1160_v21, 0.0 }
 0x160   : > { %v1865_v25 = vpop.f32.mrf.mxu0 }
 0x161   : > { %v1163_v26 = vadd.f32 %v1975_v23, %v1002_v22  ;;  %v1866_v27 = vadd.f32 %v1865_v25, %v1864_v20  ;;  %v1977_v28 = vpop.f32.mrf.mxu1 }
 0x162   : > { %v1867_v29 = vpop.f32.mrf.mxu0  ;;  %v1978_v37 = vadd.f32 %v1977_v28, %v1976_v24 }
 0x163   : > { %v1215_v31 = vmax.f32 %v1163_v26, 0.0  ;;  %v1007_v32 = vadd.f32 %v1866_v27, %v2504_v34  ;;  %v1979_v33 = vpop.f32.mrf.mxu1 }
 0x164   : > { %v1868_v35 = vpop.f32.mrf.mxu0 }
 0x165   : > { %v1738_v36 = vpack.c.bf16 %v1215_v31, %v1214_v30  ;;  %v1869_v38 = vadd.f32 %v1868_v35, %v1867_v29  ;;  %v1980_v39 = vpop.f32.mrf.mxu1  ;;  %v1168_v41 = vadd.f32 %v1978_v37, %v1007_v32 }
 0x166   : > { %v1870_v40 = vpop.f32.mrf.mxu0  ;;  %v1981_v43 = vadd.f32 %v1980_v39, %v1979_v33 }
 0x167   : > { %1766 = vst [vmem:[%s2512_s5 + $0x60] sm:$0xff] %v1738_v36   ;;  %v1010_v42 = vadd.f32 %v1869_v38, %v2504_v34  ;;  %v1982_v44 = vpop.f32.mrf.mxu1  ;;  %v1216_v50 = vmax.f32 %v1168_v41, 0.0 }
 0x168   : > { %v1871_v45 = vpop.f32.mrf.mxu0 }
 0x169   : > { %v1171_v46 = vadd.f32 %v1981_v43, %v1010_v42  ;;  %v1872_v47 = vadd.f32 %v1871_v45, %v1870_v40  ;;  %v1983_v48 = vpop.f32.mrf.mxu1 }
 0x16a   : > { %v1873_v49 = vpop.f32.mrf.mxu0  ;;  %v1984_v56 = vadd.f32 %v1983_v48, %v1982_v44 }
 0x16b   : > { %v1217_v51 = vmax.f32 %v1171_v46, 0.0  ;;  %v1015_v52 = vadd.f32 %v1872_v47, %v2504_v34  ;;  %v1985_v53 = vpop.f32.mrf.mxu1 }
 0x16c   : > { %v1874_v54 = vpop.f32.mrf.mxu0 }
 0x16d   : > { %v1743_v55 = vpack.c.bf16 %v1217_v51, %v1216_v50  ;;  %v1875_v57 = vadd.f32 %v1874_v54, %v1873_v49  ;;  %v1986_v58 = vpop.f32.mrf.mxu1  ;;  %v1176_v60 = vadd.f32 %v1984_v56, %v1015_v52 }
 0x16e   : > { %v1876_v59 = vpop.f32.mrf.mxu0  ;;  %v1987_v62 = vadd.f32 %v1986_v58, %v1985_v53 }
 0x16f   : > { %1767 = vst [vmem:[%s2512_s5 + $0x68] sm:$0xff] %v1743_v55   ;;  %v1018_v61 = vadd.f32 %v1875_v57, %v2504_v34  ;;  %v1988_v63 = vpop.f32.mrf.mxu1  ;;  %v1218_v5 = vmax.f32 %v1176_v60, 0.0 }
 0x170   : > { %v1877_v0 = vpop.f32.mrf.mxu0 }
 0x171   : > { %v1179_v1 = vadd.f32 %v1987_v62, %v1018_v61  ;;  %v1878_v2 = vadd.f32 %v1877_v0, %v1876_v59  ;;  %v1989_v3 = vpop.f32.mrf.mxu1 }
 0x172   : > { %v1879_v4 = vpop.f32.mrf.mxu0  ;;  %v1990_v11 = vadd.f32 %v1989_v3, %v1988_v63 }
 0x173   : > { %v1219_v6 = vmax.f32 %v1179_v1, 0.0  ;;  %v1023_v7 = vadd.f32 %v1878_v2, %v2504_v34  ;;  %v1991_v8 = vpop.f32.mrf.mxu1 }
 0x174   : > { %v1880_v9 = vpop.f32.mrf.mxu0 }
 0x175   : > { %v1748_v10 = vpack.c.bf16 %v1219_v6, %v1218_v5  ;;  %v1881_v12 = vadd.f32 %v1880_v9, %v1879_v4  ;;  %v1992_v13 = vpop.f32.mrf.mxu1  ;;  %v1184_v14 = vadd.f32 %v1990_v11, %v1023_v7 }
 0x176   : > { %v1993_v16 = vadd.f32 %v1992_v13, %v1991_v8 }
 0x177   : > { %1768 = vst [vmem:[%s2512_s5 + $0x70] sm:$0xff] %v1748_v10   ;;  %v1026_v15 = vadd.f32 %v1881_v12, %v2504_v34  ;;  %v1220_v18 = vmax.f32 %v1184_v14, 0.0 }
 0x179   : > { %v1187_v17 = vadd.f32 %v1993_v16, %v1026_v15 }
 0x17b   : > { %v1221_v19 = vmax.f32 %v1187_v17, 0.0 }
 0x17d   : > { %v1753_v20 = vpack.c.bf16 %v1221_v19, %v1220_v18 }
 0x17f   : > { %1769 = vst [vmem:[%s2512_s5 + $0x78] sm:$0xff] %v1753_v20  }
 0x180   : > { %2192 = shalt.err (!%p2189_p5)
}
 0x181   : > { %s2193_s23 = scalar_lea.hbm %s2563_s10, 2048  ;;  %s2197_s28 = scalar_lea.hbm %s2618_s3, 4096 }
 0x182   : > { %p2194_p6 = scmp.ne.s32.totalorder %s2563_s10, %s2193_s23  ;;  %p2198_p10 = scmp.lt.s32.totalorder %s2563_s10, %s2618_s3 }
 0x183   : > { %p2199_p11 = scmp.lt.s32.totalorder %s2197_s28, %s2193_s23 }
 0x184   : > { %p2195_p7 = pnand %p2194_p6, %p2320_p4 }
 0x185   : > { %p2200_p12 = por %p2199_p11, %p2198_p10 }
 0x186   : > { %p2196_p9 = pneg %p2195_p7 }
 0x188   : > { %p2201_p13 = pnand %p2200_p12, %p2196_p9 }
 0x18a   : > { %2204 = shalt.err (!%p2201_p13)
}
 0x18b   : > { %s2258_s4 = smov 64   ;;  %s2259_s5 = smov 4  }
 0x18c   : > { %1994 = dma.vmem_to_hbm [thread:$0]  (%p2320_p4), %s2565_s7, 2048, %s2563_s10, %s2570_s11, %s2258_s4, %s2258_s4, %s2259_s5  }
 0x18d PF: > { %p2000_p0 = scmp.ge.s32.totalorder %s2255_s17, 2  ;;  %s1412_s6 = sand.u32 1, %s2235_s12  }
 0x18e   : > { %s1413_s8 = scalar_lea.sflag [#allocation3], %s1412_s6 }
 0x18f   : > { %p1997_p1 = pnand %p2000_p0, %p2327_p8 }
 0x191   : > { %p1998_p2 = pneg %p1997_p1 }
 0x193   : > { %2230 = dma.done.wait (%p1998_p2), %s1413_s8, 2048  }
 0x194   : > { %2232 = vsyncadd (%p1998_p2), %s1413_s8, 4294965248  ;;  %s16_s17 = sadd.s32 1, %s2255_s17   ;;  %s2621_s12 = smov %s2239_s13 }
 0x195   : > { %p13_p3 = scmp.ge.s32.totalorder %s16_s17, 4   ;;  %s2622_s13 = smov %s2243_s14 }
 0x196   : > { %s2623_s14 = smov %s2333_s25  ;;  %s2624_s15 = smov %s2251_s16 }
 0x197   : > { %s2625_s16 = smov %s2627_s20  ;;  %15 = sbr.rel (!%p13_p3) target bundleno = 4 (0x4), region = 73 }
 0x19c   :  { %1418 = vsyncpa [#allocation3], 1 }
 0x19d   :  { %1420 = vsyncpa [#allocation3 + $0x1], 1 }

</bundles_post_ra>
